<compile_context>
chip_gen: v5e
topology: v5e:2x2
jax: 0.10.0
libtpu: 0.0.40
codegen_flags: <defaults>
</compile_context>

<pallas_src>
import jax
import jax.numpy as jnp
from jax.experimental import pallas as pl
from jax.experimental.pallas import tpu as pltpu


def _round_up(n, m):
    return ((n + m - 1) // m) * m


# ----------------------------------------------------------------------------
# Fused kernel: conv+BN+ReLU+pool+flatten -> shared_fc -> all task heads
# ----------------------------------------------------------------------------
def _mtnn_fused_kernel(x_ref, convmat_ref, shift_ref, w1_ref, b1_ref,
                       wa_ref, ba_ref, wb_ref, bb_ref, out_ref):
    # Stage 1: Conv1d + BatchNorm(eval) + ReLU + MaxPool1d(2) + flatten as one bf16
    # matmul against the precomputed structured matrix.  Columns are channel-major
    # (c*P + p): even conv positions in [:half], odd positions in [half:], so the
    # max of the two 128-aligned lane halves is the maxpool and the PyTorch
    # x.view(B, -1) flatten order is already in place (free).
    y = jnp.dot(x_ref[...], convmat_ref[...], preferred_element_type=jnp.float32)
    y = jnp.maximum(y + shift_ref[...], 0.0)            # fused conv-bias/BN shift + ReLU
    half = y.shape[1] // 2                               # = C * P (multiple of 128)
    feat = jnp.maximum(y[:, :half], y[:, half:]).astype(jnp.bfloat16)

    # Stage 2: shared_fc = Linear(total_features -> H) + ReLU (bf16 MXU, f32 acc)
    sf = jnp.dot(feat, w1_ref[...], preferred_element_type=jnp.float32) + b1_ref[...]
    sf = jnp.maximum(sf, 0.0).astype(jnp.bfloat16)

    # Stage 3: all heads fused.  First layers concatenated on the lane axis,
    # second layers as a single block-diagonal, 128-lane-padded matmul.
    h = jnp.dot(sf, wa_ref[...], preferred_element_type=jnp.float32) + ba_ref[...]
    h = jnp.maximum(h, 0.0).astype(jnp.bfloat16)
    heads = jnp.dot(h, wb_ref[...], preferred_element_type=jnp.float32) + bb_ref[...]

    # Single packed, lane-dense (128-aligned) bf16 writeback: [ sf | heads ].
    H = sf.shape[1]
    h_pad = out_ref.shape[1] - heads.shape[1]
    out_ref[:, :H] = sf                                  # already bf16
    out_ref[:, h_pad:] = heads.astype(out_ref.dtype)


# ----------------------------------------------------------------------------
# One-time parameter preparation (all folding happens here, not per call)
# ----------------------------------------------------------------------------
def fuse_params(params, input_dim):
    K, C = params["conv_w"].shape
    L = input_dim
    if L % 2 != 0:
        # PyTorch MaxPool1d(2) would drop the trailing element for odd L; the
        # half-split maxpool below assumes even L.
        raise ValueError("input_dim must be even")
    P = L // 2                      # MaxPool1d(2) output length
    CP = C * P
    eps = 1e-5

    # Fold eval-mode BatchNorm into the conv weights / bias.
    scale = params["bn_gamma"] / jnp.sqrt(params["bn_var"] + eps)           # (C,)
    w_sc = params["conv_w"] * scale[None, :]                                 # (K, C)
    shift_c = (params["conv_b"] - params["bn_mean"]) * scale + params["bn_beta"]

    # Structured conv matrix M[l, col]:
    #   even half : col = c*P + p       gets w_sc[k, c] at padded row l = 2p + k
    #   odd  half : col = CP + c*P + p  gets w_sc[k, c] at padded row l = 2p + k + 1
    # Rows for the two zero-pad positions are dropped -> padding is implicit.
    k_idx = jnp.arange(K)
    p_idx = jnp.arange(P)
    c_idx = jnp.arange(C)
    rows = jnp.broadcast_to(2 * p_idx[None, :, None] + k_idx[:, None, None], (K, P, C))
    cols = jnp.broadcast_to(c_idx[None, None, :] * P + p_idx[None, :, None], (K, P, C))
    vals = jnp.broadcast_to(w_sc[:, None, :], (K, P, C))

    M = jnp.zeros((L + 2, 2 * CP), jnp.float32)
    M = M.at[rows, cols].add(vals)                 # even conv output positions
    M = M.at[rows + 1, cols + CP].add(vals)        # odd conv output positions
    convmat = M[1:L + 1, :]                        # drop pad rows -> x passed unpadded

    shift_half = jnp.repeat(shift_c, P)            # column c*P + p -> shift_c[c]
    shift = jnp.concatenate([shift_half, shift_half])[None, :]               # (1, 2CP)

    H = params["w1"].shape[1]
    H_pad = max(128, _round_up(H, 128))
    heads = params["heads"]
    nh = len(heads)
    od = [int(hp["wb"].shape[1]) for hp in heads]
    offs = [0]
    for d in od:
        offs.append(offs[-1] + d)
    out_pad = max(128, _round_up(offs[-1], 128))   # lane-dense head output slab

    wa_cat = jnp.concatenate([hp["wa"] for hp in heads], axis=1)             # (H, 64*nh)
    ba_cat = jnp.concatenate([hp["ba"] for hp in heads])[None, :]            # (1, 64*nh)

    wb_blk = jnp.zeros((64 * nh, out_pad), jnp.float32)
    bb_blk = jnp.zeros((1, out_pad), jnp.float32)
    for i, hp in enumerate(heads):
        wb_blk = wb_blk.at[64 * i:64 * (i + 1), offs[i]:offs[i] + od[i]].set(hp["wb"])
        bb_blk = bb_blk.at[0, offs[i]:offs[i] + od[i]].set(hp["bb"])

    return {
        # bf16 matmul operands (cast once here), f32 bias/shift vectors.
        "convmat": convmat.astype(jnp.bfloat16), "shift": shift,
        "w1": params["w1"].astype(jnp.bfloat16), "b1": params["b1"][None, :],
        "wa": wa_cat.astype(jnp.bfloat16), "ba": ba_cat,
        "wb": wb_blk.astype(jnp.bfloat16), "bb": bb_blk,
        "H": H, "H_pad": H_pad, "out_pad": out_pad, "offs": offs, "od": od,
    }


# ----------------------------------------------------------------------------
# Forward wrapper: one fused pallas_call, grid over batch rows
# ----------------------------------------------------------------------------
def mtnn_forward(x, fused, reg_list):
    B, L = x.shape
    H = fused["H"]
    H_pad = fused["H_pad"]
    out_pad = fused["out_pad"]
    slab_w = H_pad + out_pad

    # Row tile over the batch.  Rules:
    #   * multiple of 16 (bf16 sublane packing), capped at 512 rows per step
    #     (per-step VMEM is only a few MB, far under limits on v5e/v6e/v7x);
    #   * for B > 16 the grid always has >= 2 steps so the "parallel" axis can be
    #     sharded across both v7x TensorCores;
    #   * the batch is explicitly zero-padded to a multiple of TB so there are no
    #     OOB tail blocks or masked partial stores.
    MIN_TB = 16
    if B <= MIN_TB:
        TB = MIN_TB
    else:
        TB = min(512, _round_up((B + 1) // 2, MIN_TB))
    B_pad = _round_up(B, TB)
    grid = (B_pad // TB,)

    x_p = jnp.zeros((B_pad, L), jnp.bfloat16).at[:B].set(x.astype(jnp.bfloat16))

    def row_spec(cols):
        return pl.BlockSpec((TB, cols), lambda i: (i, 0))

    def full_spec(arr):
        return pl.BlockSpec(arr.shape, lambda i: (0, 0))

    operands = (x_p, fused["convmat"], fused["shift"], fused["w1"], fused["b1"],
                fused["wa"], fused["ba"], fused["wb"], fused["bb"])
    in_specs = [row_spec(L)] + [full_spec(a) for a in operands[1:]]

    slab = pl.pallas_call(
        _mtnn_fused_kernel,
        out_shape=jax.ShapeDtypeStruct((B_pad, slab_w), jnp.bfloat16),
        grid=grid,
        in_specs=in_specs,
        out_specs=row_spec(slab_w),
        compiler_params=pltpu.CompilerParams(dimension_semantics=("parallel",)),
    )(*operands)

    shared_features = slab[:B, :H].astype(jnp.float32)
    outputs = {
        reg: slab[:B, H_pad + fused["offs"][i]:
                  H_pad + fused["offs"][i] + fused["od"][i]].astype(jnp.float32)
        for i, reg in enumerate(reg_list)
    }
    return outputs, shared_features


# ----------------------------------------------------------------------------
# Deterministic synthetic parameter init (shapes follow MTNNModel.__init__)
# ----------------------------------------------------------------------------
def init_params(key, input_dim, output_dims, hidden_dim=128, conv_channels=64, ksize=3):
    P = input_dim // 2
    F = conv_channels * P                          # total_features after flatten
    keys = jax.random.split(key, 6 + 4 * len(output_dims))

    def u(k, shape, fan_in):
        bound = 1.0 / jnp.sqrt(float(fan_in))
        return jax.random.uniform(k, shape, jnp.float32, -bound, bound)

    params = {
        "conv_w": u(keys[0], (ksize, conv_channels), ksize),   # (K, C_out), C_in = 1
        "conv_b": u(keys[1], (conv_channels,), ksize),
        "bn_gamma": jnp.ones((conv_channels,), jnp.float32),
        "bn_beta": jnp.zeros((conv_channels,), jnp.float32),
        "bn_mean": jnp.zeros((conv_channels,), jnp.float32),
        "bn_var": jnp.ones((conv_channels,), jnp.float32),
        "w1": u(keys[2], (F, hidden_dim), F),
        "b1": u(keys[3], (hidden_dim,), F),
        "heads": [],
    }
    for i, od in enumerate(output_dims):
        k0, k1, k2, k3 = keys[4 + 4 * i:8 + 4 * i]
        params["heads"].append({
            "wa": u(k0, (hidden_dim, 64), hidden_dim),
            "ba": u(k1, (64,), hidden_dim),
            "wb": u(k2, (64, od), 64),
            "bb": u(k3, (od,), 64),
        })
    return params


# ----------------------------------------------------------------------------
# Pure-JAX f32 reference (numerically mirrors the PyTorch forward, eval mode)
# ----------------------------------------------------------------------------
def reference_forward(x, params, reg_list):
    B, L = x.shape
    K, C = params["conv_w"].shape
    x_pad = jnp.pad(x, ((0, 0), (1, 1)))
    patches = jnp.stack([x_pad[:, k:k + L] for k in range(K)], axis=-1)
    y = jnp.einsum("blk,kc->blc", patches, params["conv_w"]) + params["conv_b"]
    eps = 1e-5
    y = (y - params["bn_mean"]) / jnp.sqrt(params["bn_var"] + eps)
    y = y * params["bn_gamma"] + params["bn_beta"]
    y = jnp.maximum(y, 0.0)
    y = jnp.maximum(y[:, 0::2, :], y[:, 1::2, :])                 # (B, P, C)
    feat = jnp.transpose(y, (0, 2, 1)).reshape(B, -1)             # channel-major flatten
    sf = jnp.maximum(feat @ params["w1"] + params["b1"], 0.0)
    outs = {}
    for reg, hp in zip(reg_list, params["heads"]):
        h = jnp.maximum(sf @ hp["wa"] + hp["ba"], 0.0)
        outs[reg] = h @ hp["wb"] + hp["bb"]
    return outs, sf


if __name__ == "__main__":
    # TODO(synk): Dropout(0.2) training-mode RNG masking is not implemented
    # (forward is evaluated in inference mode where dropout is the identity).
    B, input_dim = 2, 16
    hidden_dim = 128                      # MTNNModel default hidden_dim
    output_dims = [3, 5]
    reg_list = ["reg_a", "reg_b"]

    key = jax.random.PRNGKey(0)
    kx, kp = jax.random.split(key)
    x = jax.random.normal(kx, (B, input_dim), jnp.float32)
    params = init_params(kp, input_dim, output_dims, hidden_dim=hidden_dim)

    fused = fuse_params(params, input_dim)          # one-time parameter prep
    outputs, shared_features = mtnn_forward(x, fused, reg_list)
    jax.block_until_ready(shared_features)
    for reg in reg_list:
        jax.block_until_ready(outputs[reg])

    # Compare against the full-f32 reference; tolerances account for the bf16
    # matmul inputs / bf16 output slab (errors observed are a few 1e-3).
    ref_outs, ref_sf = reference_forward(x, params, reg_list)
    assert jnp.allclose(shared_features, ref_sf, atol=3e-2, rtol=3e-2)
    for reg in reg_list:
        assert jnp.allclose(outputs[reg], ref_outs[reg], atol=3e-2, rtol=3e-2)

    print("KERNEL_OK")
</pallas_src>

<mosaic_0001>
module attributes {stable_mosaic.version = 11 : i64} {
  func.func @_mtnn_fused_kernel(%arg0: i32, %arg1: memref<16x16xbf16, #tpu.memory_space<vmem>>, %arg2: memref<16x1024xbf16, #tpu.memory_space<vmem>>, %arg3: memref<1x1024xf32, #tpu.memory_space<vmem>>, %arg4: memref<512x128xbf16, #tpu.memory_space<vmem>>, %arg5: memref<1x128xf32, #tpu.memory_space<vmem>>, %arg6: memref<128x128xbf16, #tpu.memory_space<vmem>>, %arg7: memref<1x128xf32, #tpu.memory_space<vmem>>, %arg8: memref<128x128xbf16, #tpu.memory_space<vmem>>, %arg9: memref<1x128xf32, #tpu.memory_space<vmem>>, %arg10: memref<16x256xbf16, #tpu.memory_space<vmem>>) attributes {dimension_semantics = [#tpu.dimension_semantics<parallel>], iteration_bounds = array<i64: 1>, scalar_prefetch = 0 : i64, scratch_operands = 0 : i64, tpu.core_type = #tpu.core_type<tc>, window_params = [{transform_indices = @transform_0, window_bounds = array<i64: 16, 16>}, {pipeline_mode = #tpu.pipeline_mode<synchronous>, transform_indices = @transform_1, window_bounds = array<i64: 16, 1024>}, {pipeline_mode = #tpu.pipeline_mode<synchronous>, transform_indices = @transform_2, window_bounds = array<i64: 1, 1024>}, {pipeline_mode = #tpu.pipeline_mode<synchronous>, transform_indices = @transform_3, window_bounds = array<i64: 512, 128>}, {pipeline_mode = #tpu.pipeline_mode<synchronous>, transform_indices = @transform_4, window_bounds = array<i64: 1, 128>}, {pipeline_mode = #tpu.pipeline_mode<synchronous>, transform_indices = @transform_5, window_bounds = array<i64: 128, 128>}, {pipeline_mode = #tpu.pipeline_mode<synchronous>, transform_indices = @transform_6, window_bounds = array<i64: 1, 128>}, {pipeline_mode = #tpu.pipeline_mode<synchronous>, transform_indices = @transform_7, window_bounds = array<i64: 128, 128>}, {pipeline_mode = #tpu.pipeline_mode<synchronous>, transform_indices = @transform_8, window_bounds = array<i64: 1, 128>}, {transform_indices = @transform_9, window_bounds = array<i64: 16, 256>}]} {
    %c0 = arith.constant 0 : index
    %c0_0 = arith.constant 0 : index
    %0 = vector.load %arg1[%c0, %c0_0] : memref<16x16xbf16, #tpu.memory_space<vmem>>, vector<16x16xbf16>
    %c0_1 = arith.constant 0 : index
    %c0_2 = arith.constant 0 : index
    %1 = vector.load %arg2[%c0_1, %c0_2] : memref<16x1024xbf16, #tpu.memory_space<vmem>>, vector<16x1024xbf16>
    %cst = arith.constant dense<0.000000e+00> : vector<16x1024xf32>
    %2 = tpu.matmul %0, %1, %cst {dimension_numbers = #tpu.dot_dimension_numbers<[1], [0], [0], [1], [0, 0, 1, 1], [], []>} : vector<16x16xbf16>, vector<16x1024xbf16>, vector<16x1024xf32> -> vector<16x1024xf32>
    %c0_3 = arith.constant 0 : index
    %c0_4 = arith.constant 0 : index
    %3 = vector.load %arg3[%c0_3, %c0_4] : memref<1x1024xf32, #tpu.memory_space<vmem>>, vector<1x1024xf32>
    %4 = vector.broadcast %3 : vector<1x1024xf32> to vector<16x1024xf32>
    %5 = arith.addf %2, %4 : vector<16x1024xf32>
    %cst_5 = arith.constant 0.000000e+00 : f32
    %6 = vector.broadcast %cst_5 : f32 to vector<16x1024xf32>
    %7 = arith.maximumf %5, %6 : vector<16x1024xf32>
    %8 = vector.extract_strided_slice %7 {offsets = [0, 0], sizes = [16, 512], strides = [1, 1]} : vector<16x1024xf32> to vector<16x512xf32>
    %9 = vector.extract_strided_slice %7 {offsets = [0, 512], sizes = [16, 512], strides = [1, 1]} : vector<16x1024xf32> to vector<16x512xf32>
    %10 = arith.maximumf %8, %9 : vector<16x512xf32>
    %11 = arith.truncf %10 : vector<16x512xf32> to vector<16x512xbf16>
    %c0_6 = arith.constant 0 : index
    %c0_7 = arith.constant 0 : index
    %12 = vector.load %arg4[%c0_6, %c0_7] : memref<512x128xbf16, #tpu.memory_space<vmem>>, vector<512x128xbf16>
    %cst_8 = arith.constant dense<0.000000e+00> : vector<16x128xf32>
    %13 = tpu.matmul %11, %12, %cst_8 {dimension_numbers = #tpu.dot_dimension_numbers<[1], [0], [0], [1], [0, 0, 1, 1], [], []>} : vector<16x512xbf16>, vector<512x128xbf16>, vector<16x128xf32> -> vector<16x128xf32>
    %c0_9 = arith.constant 0 : index
    %c0_10 = arith.constant 0 : index
    %14 = vector.load %arg5[%c0_9, %c0_10] : memref<1x128xf32, #tpu.memory_space<vmem>>, vector<1x128xf32>
    %15 = vector.broadcast %14 : vector<1x128xf32> to vector<16x128xf32>
    %16 = arith.addf %13, %15 : vector<16x128xf32>
    %cst_11 = arith.constant 0.000000e+00 : f32
    %17 = vector.broadcast %cst_11 : f32 to vector<16x128xf32>
    %18 = arith.maximumf %16, %17 : vector<16x128xf32>
    %19 = arith.truncf %18 : vector<16x128xf32> to vector<16x128xbf16>
    %c0_12 = arith.constant 0 : index
    %c0_13 = arith.constant 0 : index
    %20 = vector.load %arg6[%c0_12, %c0_13] : memref<128x128xbf16, #tpu.memory_space<vmem>>, vector<128x128xbf16>
    %cst_14 = arith.constant dense<0.000000e+00> : vector<16x128xf32>
    %21 = tpu.matmul %19, %20, %cst_14 {dimension_numbers = #tpu.dot_dimension_numbers<[1], [0], [0], [1], [0, 0, 1, 1], [], []>} : vector<16x128xbf16>, vector<128x128xbf16>, vector<16x128xf32> -> vector<16x128xf32>
    %c0_15 = arith.constant 0 : index
    %c0_16 = arith.constant 0 : index
    %22 = vector.load %arg7[%c0_15, %c0_16] : memref<1x128xf32, #tpu.memory_space<vmem>>, vector<1x128xf32>
    %23 = vector.broadcast %22 : vector<1x128xf32> to vector<16x128xf32>
    %24 = arith.addf %21, %23 : vector<16x128xf32>
    %cst_17 = arith.constant 0.000000e+00 : f32
    %25 = vector.broadcast %cst_17 : f32 to vector<16x128xf32>
    %26 = arith.maximumf %24, %25 : vector<16x128xf32>
    %27 = arith.truncf %26 : vector<16x128xf32> to vector<16x128xbf16>
    %c0_18 = arith.constant 0 : index
    %c0_19 = arith.constant 0 : index
    %28 = vector.load %arg8[%c0_18, %c0_19] : memref<128x128xbf16, #tpu.memory_space<vmem>>, vector<128x128xbf16>
    %cst_20 = arith.constant dense<0.000000e+00> : vector<16x128xf32>
    %29 = tpu.matmul %27, %28, %cst_20 {dimension_numbers = #tpu.dot_dimension_numbers<[1], [0], [0], [1], [0, 0, 1, 1], [], []>} : vector<16x128xbf16>, vector<128x128xbf16>, vector<16x128xf32> -> vector<16x128xf32>
    %c0_21 = arith.constant 0 : index
    %c0_22 = arith.constant 0 : index
    %30 = vector.load %arg9[%c0_21, %c0_22] : memref<1x128xf32, #tpu.memory_space<vmem>>, vector<1x128xf32>
    %31 = vector.broadcast %30 : vector<1x128xf32> to vector<16x128xf32>
    %32 = arith.addf %29, %31 : vector<16x128xf32>
    %c0_23 = arith.constant 0 : index
    %c0_24 = arith.constant 0 : index
    %33 = vector.load %arg10[%c0_23, %c0_24] : memref<16x256xbf16, #tpu.memory_space<vmem>>, vector<16x128xbf16>
    tpu.vector_store %arg10[%c0_23, %c0_24], %19 {strides = array<i32>} : memref<16x256xbf16, #tpu.memory_space<vmem>>, vector<16x128xbf16>,
    %34 = arith.truncf %32 : vector<16x128xf32> to vector<16x128xbf16>
    %c0_25 = arith.constant 0 : index
    %c128 = arith.constant 128 : index
    %35 = vector.load %arg10[%c0_25, %c128] : memref<16x256xbf16, #tpu.memory_space<vmem>>, vector<16x128xbf16>
    tpu.vector_store %arg10[%c0_25, %c128], %34 {strides = array<i32>} : memref<16x256xbf16, #tpu.memory_space<vmem>>, vector<16x128xbf16>,
    return
  }
  func.func @transform_0(%arg0: i32) -> (i32, i32) {
    %c0_i32 = arith.constant 0 : i32
    %c0_i32_0 = arith.constant 0 : i32
    return %arg0, %c0_i32 : i32, i32
  }
  func.func @transform_1(%arg0: i32) -> (i32, i32) {
    %c0_i32 = arith.constant 0 : i32
    %c0_i32_0 = arith.constant 0 : i32
    %c0_i32_1 = arith.constant 0 : i32
    return %c0_i32, %c0_i32_0 : i32, i32
  }
  func.func @transform_2(%arg0: i32) -> (i32, i32) {
    %c0_i32 = arith.constant 0 : i32
    %c0_i32_0 = arith.constant 0 : i32
    %c0_i32_1 = arith.constant 0 : i32
    return %c0_i32, %c0_i32_0 : i32, i32
  }
  func.func @transform_3(%arg0: i32) -> (i32, i32) {
    %c0_i32 = arith.constant 0 : i32
    %c0_i32_0 = arith.constant 0 : i32
    %c0_i32_1 = arith.constant 0 : i32
    return %c0_i32, %c0_i32_0 : i32, i32
  }
  func.func @transform_4(%arg0: i32) -> (i32, i32) {
    %c0_i32 = arith.constant 0 : i32
    %c0_i32_0 = arith.constant 0 : i32
    %c0_i32_1 = arith.constant 0 : i32
    return %c0_i32, %c0_i32_0 : i32, i32
  }
  func.func @transform_5(%arg0: i32) -> (i32, i32) {
    %c0_i32 = arith.constant 0 : i32
    %c0_i32_0 = arith.constant 0 : i32
    %c0_i32_1 = arith.constant 0 : i32
    return %c0_i32, %c0_i32_0 : i32, i32
  }
  func.func @transform_6(%arg0: i32) -> (i32, i32) {
    %c0_i32 = arith.constant 0 : i32
    %c0_i32_0 = arith.constant 0 : i32
    %c0_i32_1 = arith.constant 0 : i32
    return %c0_i32, %c0_i32_0 : i32, i32
  }
  func.func @transform_7(%arg0: i32) -> (i32, i32) {
    %c0_i32 = arith.constant 0 : i32
    %c0_i32_0 = arith.constant 0 : i32
    %c0_i32_1 = arith.constant 0 : i32
    return %c0_i32, %c0_i32_0 : i32, i32
  }
  func.func @transform_8(%arg0: i32) -> (i32, i32) {
    %c0_i32 = arith.constant 0 : i32
    %c0_i32_0 = arith.constant 0 : i32
    %c0_i32_1 = arith.constant 0 : i32
    return %c0_i32, %c0_i32_0 : i32, i32
  }
  func.func @transform_9(%arg0: i32) -> (i32, i32) {
    %c0_i32 = arith.constant 0 : i32
    %c0_i32_0 = arith.constant 0 : i32
    return %arg0, %c0_i32 : i32, i32
  }
}

</mosaic_0001>

<bundles_post_ra>
// kernel: tpu_custom_call.1
= control target key start
LH: loop header
LB: loop body
LE: loop exit
PB: predicated region body
PF: predicated region fallthrough
CT: control target
= control target key end

     0   :  { %14 = vsyncpa [#allocation3], 0  ;;  %s1473_s0 = inlined_call_operand.hbm [shape: bf16[16,16], index: 0, kind: input, shape index: {}]   ;;  %s1474_s1 = inlined_call_operand.hbm [shape: bf16[16,1024], index: 1, kind: input, shape index: {}]   ;;  %s1475_s2 = inlined_call_operand.hbm [shape: f32[1,1024], index: 2, kind: input, shape index: {}]   ;;  %s1476_s3 = inlined_call_operand.hbm [shape: bf16[512,128], index: 3, kind: input, shape index: {}]   ;;  %s1477_s4 = inlined_call_operand.vmem [shape: f32[1,128], index: 4, kind: input, shape index: {}]   ;;  %s1478_s5 = inlined_call_operand.hbm [shape: bf16[128,128], index: 5, kind: input, shape index: {}]   ;;  %s1479_s6 = inlined_call_operand.vmem [shape: f32[1,128], index: 6, kind: input, shape index: {}]   ;;  %s1480_s7 = inlined_call_operand.hbm [shape: bf16[128,128], index: 7, kind: input, shape index: {}]   ;;  %s1481_s8 = inlined_call_operand.vmem [shape: f32[1,128], index: 8, kind: input, shape index: {}]   ;;  %s1482_s9 = inlined_call_operand.hbm [shape: bf16[16,256], index: 9, kind: output, shape index: {}]  }
   0x1   :  { %15 = vsyncpa [#allocation6], 0 }
   0x2   :  { %16 = vsyncpa [#allocation9], 0 }
   0x3   :  { %17 = vsyncpa [#allocation12], 0  ;;  %s36_s11 = sshll.u32 %s1474_s1, 4  ;;  %s37_s11 = int_to_ptr.hbm [resolvable:$true] %s36_s11 }
   0x4   :  { %18 = vsyncpa [#allocation4], 0  ;;  %s1362_s12 = smov [#allocation5]   ;;  %s1363_s14 = smov 512  }
   0x5   :  { %s38_s13 = sshll.u32 %s1362_s12, 4  ;;  %s1364_s15 = smov 32   ;;  %s39_s13 = int_to_ptr.vmem [resolvable:$true] %s38_s13 }
   0x6   :  { %44 = dma.hbm_to_vmem [thread:$0]  %s37_s11, 1024, %s39_s13, [#allocation6], %s1363_s14, %s1363_s14, %s1364_s15  }
   0x7   :  { %s60_s18 = sshll.u32 %s1476_s3, 4  ;;  %s1365_s19 = smov [#allocation8]   ;;  %s61_s18 = int_to_ptr.hbm [resolvable:$true] %s60_s18 }
   0x8   :  { %s62_s20 = sshll.u32 %s1365_s19, 4  ;;  %s23_s23 = sshll.u32 %s1473_s0, 4  ;;  %s63_s20 = int_to_ptr.vmem [resolvable:$true] %s62_s20  ;;  %s24_s23 = int_to_ptr.hbm [resolvable:$true] %s23_s23 }
   0x9   :  { %s1366_s1 = smov 64   ;;  %s1367_s24 = smov 4  }
   0xa   :  { %68 = dma.hbm_to_vmem [thread:$0]  %s61_s18, 4096, %s63_s20, [#allocation9], %s1366_s1, %s1366_s1, %s1367_s24  }
   0xb   :  { %s50_s27 = sshll.u32 %s1475_s2, 4  ;;  %s1368_s28 = smov [#allocation2]   ;;  %s51_s27 = int_to_ptr.hbm [resolvable:$true] %s50_s27 }
   0xc   :  { %s25_s29 = sshll.u32 %s1368_s28, 4  ;;  %s1369_s3 = smov [#allocation7]   ;;  %s26_s29 = int_to_ptr.vmem [resolvable:$true] %s25_s29 }
   0xd   :  { %31 = dma.hbm_to_vmem [thread:$0]  %s24_s23, 128, %s26_s29, [#allocation3], %s1366_s1, %s1366_s1, %s1367_s24  }
   0xe   :  { %s52_s30 = sshll.u32 %s1369_s3, 4  ;;  %s75_s0 = sshll.u32 %s1478_s5, 4  ;;  %s53_s30 = int_to_ptr.vmem [resolvable:$true] %s52_s30  ;;  %s76_s0 = int_to_ptr.hbm [resolvable:$true] %s75_s0 }
   0xf   :  { %55 = dma.hbm_to_vmem [thread:$0]  %s51_s27, 128, %s53_s30, [#allocation6]  }
  0x10   :  { %s90_s14 = sshll.u32 %s1480_s7, 4  ;;  %s1370_s15 = smov [#allocation10]   ;;  %s91_s14 = int_to_ptr.hbm [resolvable:$true] %s90_s14 }
  0x11   :  { %s77_s2 = sshll.u32 %s1370_s15, 4  ;;  %s1371_s16 = smov [#allocation11]   ;;  %s78_s2 = int_to_ptr.vmem [resolvable:$true] %s77_s2 }
  0x12   :  { %83 = dma.hbm_to_vmem [thread:$0]  %s76_s0, 1024, %s78_s2, [#allocation9], %s1366_s1, %s1366_s1, %s1367_s24  }
  0x13   :  { %s92_s17 = sshll.u32 %s1371_s16, 4  ;;  %s93_s17 = int_to_ptr.vmem [resolvable:$true] %s92_s17 }
  0x14   :  { %98 = dma.hbm_to_vmem [thread:$0]  %s91_s14, 1024, %s93_s17, [#allocation12], %s1366_s1, %s1366_s1, %s1367_s24  }
  0x15   :  { %1352 = dma.done.wait [#allocation3], 128  }
  0x16   :  { %1353 = vsyncadd [#allocation3], 4294967168 }
  0x17   :  { %1354 = dma.done.wait [#allocation6], 1152  }
  0x18   :  { %1355 = vsyncadd [#allocation6], 4294966144 }
  0x19   :  { %1356 = dma.done.wait [#allocation9], 5120  }
  0x1a   :  { %1357 = vsyncadd [#allocation9], 4294962176 }
  0x1b   :  { %1358 = dma.done.wait [#allocation12], 1024  }
  0x1c   :  { %1359 = vsyncadd [#allocation12], 4294966272  ;;  %v870_v0 = vld [vmem:[#allocation5] sm:$0xf]  ;;  %v1101_v2 = vld [vmem:[#allocation5 + $0x4] sm:$0xf] }
  0x1d   :  { %v1105_v1 = vld [vmem:[#allocation5 + $0x1c] sm:$0xf0]  ;;  %v872_v4 = vld [vmem:[#allocation5 + $0x20] sm:$0xf0]  ;;  %v1100_v5 = vld [vmem:[#allocation2] sm:$0xff]  ;;  %vm199_vm0 = vcmask 130048  }
  0x1e   :  { %v871_v3 = vor.u32 %v1105_v1, %v870_v0  ;;  %v878_v6 = vld [vmem:[#allocation5 + $0x8] sm:$0xf]  ;;  %v875_v7 = vor.u32 %v1101_v2, %v872_v4  ;;  %v1102_v9 = vld [vmem:[#allocation5 + $0xc] sm:$0xf]  ;;  %v886_v13 = vld [vmem:[#allocation5 + $0x10] sm:$0xf] }
  0x1f   :  { %v1106_v8 = vld [vmem:[#allocation5 + $0x24] sm:$0xf0]  ;;  %v880_v10 = vld [vmem:[#allocation5 + $0x28] sm:$0xf0]  ;;  %v1107_v14 = vld [vmem:[#allocation5 + $0x2c] sm:$0xf0] }
  0x20   :  { %210 = vmatpush.bf16.msra.mxu2 %v871_v3  ;;  %v879_v11 = vor.u32 %v1106_v8, %v878_v6  ;;  %v883_v12 = vor.u32 %v1102_v9, %v880_v10  ;;  %v1103_v15 = vld [vmem:[#allocation5 + $0x14] sm:$0xf]  ;;  %224 = vmatpush.bf16.msra.mxu3 %v875_v7  ;;  %v887_v16 = vor.u32 %v1107_v14, %v886_v13  ;;  %v894_v18 = vld [vmem:[#allocation5 + $0x18] sm:$0xf]  ;;  %v1104_v22 = vld [vmem:[#allocation5 + $0x1c] sm:$0xf] }
  0x21   :  { %v888_v17 = vld [vmem:[#allocation5 + $0x30] sm:$0xf0]  ;;  %v1108_v19 = vld [vmem:[#allocation5 + $0x34] sm:$0xf0]  ;;  %v896_v23 = vld [vmem:[#allocation5 + $0x38] sm:$0xf0] }
  0x22   :  { %v891_v20 = vor.u32 %v1103_v15, %v888_v17  ;;  %v895_v21 = vor.u32 %v1108_v19, %v894_v18  ;;  %266 = vmatpush.bf16.msra.mxu0 %v887_v16  ;;  %v899_v24 = vor.u32 %v1104_v22, %v896_v23  ;;  %v1116_v25 = vld [vmem:[#allocation8 + $0x38] sm:$0xff]  ;;  %v1123_v27 = vld [vmem:[#allocation8 + $0x70] sm:$0xff]  ;;  %v1122_v29 = vld [vmem:[#allocation8 + $0x68] sm:$0xff]  ;;  %s1372_s21 = smov [#allocation13]   ;;  %s1373_s24 = smov 128  }
  0x23   :  { %900 = vmatmul.msk.bf16.vlgmr.msra.gmra.mxu2 %vm199_vm0, %v1100_v5  ;;  %901 = vmatmul.msk.bf16.vlgmr.msra.gmra.mxu3 %vm199_vm0, %v1100_v5  ;;  %v1124_v26 = vld [vmem:[#allocation8 + $0x78] sm:$0xff]  ;;  %v1115_v28 = vld [vmem:[#allocation8 + $0x30] sm:$0xff]  ;;  %v1114_v30 = vld [vmem:[#allocation8 + $0x28] sm:$0xff]  ;;  %s846_s22 = sshll.u32 %s1372_s21, 4  ;;  %s1374_s25 = smov 8   ;;  %s847_s22 = int_to_ptr.vmem [resolvable:$true] %s846_s22 }
  0x24   :  { %238 = vmatpush.bf16.msrb.mxu2 %v879_v11  ;;  %252 = vmatpush.bf16.msrb.mxu3 %v883_v12  ;;  %v1121_v31 = vld [vmem:[#allocation8 + $0x60] sm:$0xff]  ;;  %v1112_v33 = vld [vmem:[#allocation8 + $0x18] sm:$0xff]  ;;  %v1111_v35 = vld [vmem:[#allocation8 + $0x10] sm:$0xff] }
  0x25   :  { %280 = vmatpush.bf16.msra.mxu1 %v891_v20  ;;  %904 = vmatmul.msk.bf16.vlgmr.msra.gmra.mxu0 %vm199_vm0, %v1100_v5  ;;  %v1113_v32 = vld [vmem:[#allocation8 + $0x20] sm:$0xff]  ;;  %v1120_v34 = vld [vmem:[#allocation8 + $0x58] sm:$0xff]  ;;  %v1119_v36 = vld [vmem:[#allocation8 + $0x50] sm:$0xff] }
  0x26   :  { %603 = vmatpush.bf16.msrb.mxu0 %v1116_v25  ;;  %v1110_v37 = vld [vmem:[#allocation8 + $0x8] sm:$0xff]  ;;  %v1109_v39 = vld [vmem:[#allocation8] sm:$0xff]  ;;  %v1132_v41 = vld [vmem:[#allocation8 + $0xb8] sm:$0xff] }
  0x27   :  { %v1118_v38 = vld [vmem:[#allocation8 + $0x48] sm:$0xff]  ;;  %v1117_v40 = vld [vmem:[#allocation8 + $0x40] sm:$0xff]  ;;  %v1140_v42 = vld [vmem:[#allocation8 + $0xf8] sm:$0xff] }
  0x28   :  { %294 = vmatpush.bf16.msra.mxu2 %v895_v21  ;;  %308 = vmatpush.bf16.msra.mxu3 %v899_v24  ;;  %v1131_v43 = vld [vmem:[#allocation8 + $0xb0] sm:$0xff]  ;;  %v1130_v45 = vld [vmem:[#allocation8 + $0xa8] sm:$0xff]  ;;  %v1129_v47 = vld [vmem:[#allocation8 + $0xa0] sm:$0xff] }
  0x29   :  { %617 = vmatpush.bf16.msrb.mxu1 %v1124_v26  ;;  %v1139_v44 = vld [vmem:[#allocation8 + $0xf0] sm:$0xff]  ;;  %v1138_v46 = vld [vmem:[#allocation8 + $0xe8] sm:$0xff]  ;;  %v1137_v48 = vld [vmem:[#allocation8 + $0xe0] sm:$0xff] }
  0x2a   :  { %905 = vmatmul.msk.bf16.vlgmr.msra.gmra.mxu1 %vm199_vm0, %v1100_v5  ;;  %604 = vmatpush.bf16.msrb.mxu0 %v1115_v28  ;;  %v1451_v50 = vld [vmem:[#allocation7] sm:$0xff]  ;;  %v1127_v63 = vld [vmem:[#allocation8 + $0x90] sm:$0xff]  ;;  %v1126_v12 = vld [vmem:[#allocation8 + $0x88] sm:$0xff] }
  0x2b   :  { %v138_v53 = vperm.slane %v1451_v50, 0  ;;  %v142_v55 = vperm.slane %v1451_v50, 4  ;;  %v1128_v56 = vld [vmem:[#allocation8 + $0x98] sm:$0xff]  ;;  %v139_v58 = vperm.slane %v1451_v50, 1  ;;  %v143_v59 = vperm.slane %v1451_v50, 5  ;;  %v1135_v0 = vld [vmem:[#allocation8 + $0xd0] sm:$0xff] }
  0x2c   :  { %v1136_v57 = vld [vmem:[#allocation8 + $0xd8] sm:$0xff]  ;;  %v1134_v13 = vld [vmem:[#allocation8 + $0xc8] sm:$0xff]  ;;  %v1125_v22 = vld [vmem:[#allocation8 + $0x80] sm:$0xff] }
  0x2d   :  { %618 = vmatpush.bf16.msrb.mxu1 %v1123_v27  ;;  %v1133_v23 = vld [vmem:[#allocation8 + $0xc0] sm:$0xff] }
  0x2e   :  { %605 = vmatpush.bf16.msrb.mxu0 %v1114_v30 }
  0x31   :  { %619 = vmatpush.bf16.msrb.mxu1 %v1122_v29 }
  0x32   :  { %606 = vmatpush.bf16.msrb.mxu0 %v1113_v32 }
  0x33   :  { %902 = vmatmul.msk.bf16.vlgmr.msrb.gmra.mxu2 %vm199_vm0, %v1100_v5  ;;  %903 = vmatmul.msk.bf16.vlgmr.msrb.gmra.mxu3 %vm199_vm0, %v1100_v5 }
  0x34   :  { %631 = vmatpush.bf16.msrb.mxu2 %v1132_v41  ;;  %645 = vmatpush.bf16.msrb.mxu3 %v1140_v42 }
  0x35   :  { %620 = vmatpush.bf16.msrb.mxu1 %v1121_v31 }
  0x36   :  { %607 = vmatpush.bf16.msrb.mxu0 %v1112_v33  ;;  %v144_v33 = vperm.slane %v1451_v50, 6 }
  0x38   :  { %632 = vmatpush.bf16.msrb.mxu2 %v1131_v43  ;;  %646 = vmatpush.bf16.msrb.mxu3 %v1139_v44 }
  0x39   :  { %621 = vmatpush.bf16.msrb.mxu1 %v1120_v34 }
  0x3a   :  { %608 = vmatpush.bf16.msrb.mxu0 %v1111_v35  ;;  %v145_v35 = vperm.slane %v1451_v50, 7 }
  0x3c   :  { %633 = vmatpush.bf16.msrb.mxu2 %v1130_v45  ;;  %647 = vmatpush.bf16.msrb.mxu3 %v1138_v46 }
  0x3d   :  { %622 = vmatpush.bf16.msrb.mxu1 %v1119_v36  ;;  %v140_v36 = vperm.slane %v1451_v50, 2 }
  0x3e   :  { %609 = vmatpush.bf16.msrb.mxu0 %v1110_v37  ;;  %v141_v37 = vperm.slane %v1451_v50, 3 }
  0x40   :  { %634 = vmatpush.bf16.msrb.mxu2 %v1129_v47  ;;  %648 = vmatpush.bf16.msrb.mxu3 %v1137_v48 }
  0x41   :  { %623 = vmatpush.bf16.msrb.mxu1 %v1118_v38 }
  0x42   :  { %610 = vmatpush.bf16.msrb.mxu0 %v1109_v39 }
  0x43   :  { %906 = vmatmul.msk.bf16.vlgmr.msra.gmra.mxu2 %vm199_vm0, %v1100_v5  ;;  %907 = vmatmul.msk.bf16.vlgmr.msra.gmra.mxu3 %vm199_vm0, %v1100_v5 }
  0x44   :  { %635 = vmatpush.bf16.msrb.mxu2 %v1128_v56  ;;  %649 = vmatpush.bf16.msrb.mxu3 %v1136_v57 }
  0x45   :  { %624 = vmatpush.bf16.msrb.mxu1 %v1117_v40 }
  0x48   :  { %636 = vmatpush.bf16.msrb.mxu2 %v1127_v63  ;;  %650 = vmatpush.bf16.msrb.mxu3 %v1135_v0  ;;  %v1147_v63 = vld [vmem:[#allocation10 + $0x30] sm:$0xff]  ;;  %v1146_v0 = vld [vmem:[#allocation10 + $0x28] sm:$0xff] }
  0x4c   :  { %637 = vmatpush.bf16.msrb.mxu2 %v1126_v12  ;;  %651 = vmatpush.bf16.msrb.mxu3 %v1134_v13 }
  0x50   :  { %638 = vmatpush.bf16.msrb.mxu2 %v1125_v22  ;;  %652 = vmatpush.bf16.msrb.mxu3 %v1133_v23 }
  0xa2   :  { %v268_v49 = vpop.f32.mrf.mxu0 }
  0xa3   :  { %v269_v61 = vadd.f32 %v268_v49, %v142_v55 }
  0xa5   :  { %v319_v8 = vmax.f32 %v269_v61, 0.0 }
  0xa6   :  { %v212_v52 = vpop.f32.mrf.mxu2  ;;  %v226_v54 = vpop.f32.mrf.mxu3 }
  0xa7   :  { %v282_v51 = vpop.f32.mrf.mxu1  ;;  %v213_v60 = vadd.f32 %v212_v52, %v138_v53  ;;  %v227_v1 = vadd.f32 %v226_v54, %v139_v58 }
  0xa8   :  { %v283_v2 = vadd.f32 %v282_v51, %v143_v59 }
  0xa9   :  { %v315_v7 = vmax.f32 %v213_v60, 0.0  ;;  %v316_v14 = vmax.f32 %v227_v1, 0.0  ;;  %v1145_v1 = vld [vmem:[#allocation10 + $0x20] sm:$0xff] }
  0xaa   :  { %v270_v62 = vpop.f32.mrf.mxu0  ;;  %v320_v15 = vmax.f32 %v283_v2, 0.0  ;;  %v1144_v2 = vld [vmem:[#allocation10 + $0x18] sm:$0xff] }
  0xab   :  { %v271_v3 = vadd.f32 %v270_v62, %v142_v55  ;;  %v331_v20 = vmax.f32 %v315_v7, %v319_v8  ;;  %v1148_v62 = vld [vmem:[#allocation10 + $0x38] sm:$0xff]  ;;  %v1181_v8 = vld [vmem:[%s1477_s4] ss:$0 sm:$0xff] }
  0xac   :  { %v332_v24 = vmax.f32 %v316_v14, %v320_v15  ;;  %737 = vmatpush.bf16.msra.mxu0 %v1148_v62  ;;  %v1153_v14 = vld [vmem:[#allocation11 + $0x20] sm:$0xff] }
  0xad   :  { %v327_v11 = vmax.f32 %v271_v3, 0.0  ;;  %v1143_v3 = vld [vmem:[#allocation10 + $0x10] sm:$0xff] }
  0xae   :  { %v214_v6 = vpop.f32.mrf.mxu2  ;;  %v228_v10 = vpop.f32.mrf.mxu3 }
  0xaf   :  { %v284_v4 = vpop.f32.mrf.mxu1  ;;  %v215_v9 = vadd.f32 %v214_v6, %v138_v53  ;;  %v229_v16 = vadd.f32 %v228_v10, %v139_v58  ;;  %v1156_v6 = vld [vmem:[#allocation11 + $0x38] sm:$0xff] }
  0xb0   :  { %v285_v5 = vadd.f32 %v284_v4, %v143_v59  ;;  %738 = vmatpush.bf16.msra.mxu0 %v1147_v63  ;;  %v1142_v4 = vld [vmem:[#allocation10 + $0x8] sm:$0xff]  ;;  %822 = vmatpush.bf16.msra.mxu1 %v1156_v6 }
  0xb1   :  { %v323_v18 = vmax.f32 %v215_v9, 0.0  ;;  %v324_v19 = vmax.f32 %v229_v16, 0.0  ;;  %v1155_v9 = vld [vmem:[#allocation11 + $0x30] sm:$0xff] }
  0xb2   :  { %v328_v17 = vmax.f32 %v285_v5, 0.0  ;;  %v1141_v5 = vld [vmem:[#allocation10] sm:$0xff] }
  0xb3   :  { %v335_v21 = vmax.f32 %v323_v18, %v327_v11  ;;  %v1154_v11 = vld [vmem:[#allocation11 + $0x28] sm:$0xff] }
  0xb4   :  { %v336_v25 = vmax.f32 %v324_v19, %v328_v17  ;;  %739 = vmatpush.bf16.msra.mxu0 %v1146_v0  ;;  %823 = vmatpush.bf16.msra.mxu1 %v1155_v9 }
  0xb5   :  { %v339_v26 = vpack.c.bf16 %v335_v21, %v331_v20 }
  0xb6   :  { %v240_v27 = vpop.f32.mrf.mxu2  ;;  %v340_v28 = vpack.c.bf16 %v336_v25, %v332_v24  ;;  %v254_v29 = vpop.f32.mrf.mxu3 }
  0xb7   :  { %611 = vmatmul.bf16.vlgmr.msrb.gmra.mxu0 %v339_v26  ;;  %v241_v40 = vadd.f32 %v240_v27, %v140_v36  ;;  %v255_v42 = vadd.f32 %v254_v29, %v141_v37 }
  0xb8   :  { %625 = vmatmul.bf16.vlgmr.msrb.gmra.mxu1 %v340_v28  ;;  %740 = vmatpush.bf16.msra.mxu0 %v1145_v1 }
  0xb9   :  { %v317_v51 = vmax.f32 %v241_v40, 0.0  ;;  %v318_v54 = vmax.f32 %v255_v42, 0.0  ;;  %824 = vmatpush.bf16.msra.mxu1 %v1154_v11 }
  0xbc   :  { %741 = vmatpush.bf16.msra.mxu0 %v1144_v2 }
  0xbd   :  { %825 = vmatpush.bf16.msra.mxu1 %v1153_v14 }
  0xbe   :  { %v242_v30 = vpop.f32.mrf.mxu2  ;;  %v256_v31 = vpop.f32.mrf.mxu3 }
  0xbf   :  { %v243_v41 = vadd.f32 %v242_v30, %v140_v36  ;;  %v257_v43 = vadd.f32 %v256_v31, %v141_v37  ;;  %v1150_v36 = vld [vmem:[#allocation11 + $0x8] sm:$0xff]  ;;  %v1149_v37 = vld [vmem:[#allocation11] sm:$0xff] }
  0xc0   :  { %742 = vmatpush.bf16.msra.mxu0 %v1143_v3 }
  0xc1   :  { %v325_v52 = vmax.f32 %v243_v41, 0.0  ;;  %v326_v55 = vmax.f32 %v257_v43, 0.0 }
  0xc4   :  { %743 = vmatpush.bf16.msra.mxu0 %v1142_v4 }
  0xc6   :  { %v296_v32 = vpop.f32.mrf.mxu2  ;;  %v310_v34 = vpop.f32.mrf.mxu3 }
  0xc7   :  { %v297_v38 = vadd.f32 %v296_v32, %v144_v33  ;;  %v311_v39 = vadd.f32 %v310_v34, %v145_v35  ;;  %v1152_v34 = vld [vmem:[#allocation11 + $0x18] sm:$0xff] }
  0xc8   :  { %744 = vmatpush.bf16.msra.mxu0 %v1141_v5  ;;  %826 = vmatpush.bf16.msra.mxu1 %v1152_v34 }
  0xc9   :  { %v321_v45 = vmax.f32 %v297_v38, 0.0  ;;  %v322_v48 = vmax.f32 %v311_v39, 0.0  ;;  %v1182_v39 = vld [vmem:[%s1479_s6] ss:$0 sm:$0xff]  ;;  %s848_s6 = sshll.u32 %s1482_s9, 4  ;;  %s849_s6 = int_to_ptr.hbm [resolvable:$true] %s848_s6 }
  0xcb   :  { %v333_v57 = vmax.f32 %v317_v51, %v321_v45  ;;  %v334_v58 = vmax.f32 %v318_v54, %v322_v48 }
  0xce   :  { %v298_v44 = vpop.f32.mrf.mxu2  ;;  %v312_v47 = vpop.f32.mrf.mxu3 }
  0xcf   :  { %v299_v46 = vadd.f32 %v298_v44, %v144_v33  ;;  %v313_v49 = vadd.f32 %v312_v47, %v145_v35  ;;  %v1151_v35 = vld [vmem:[#allocation11 + $0x10] sm:$0xff] }
  0xd0   :  { %827 = vmatpush.bf16.msra.mxu1 %v1151_v35 }
  0xd1   :  { %v329_v53 = vmax.f32 %v299_v46, 0.0  ;;  %v330_v56 = vmax.f32 %v313_v49, 0.0  ;;  %v1183_v46 = vld [vmem:[%s1481_s8] ss:$0 sm:$0xff] }
  0xd3   :  { %v337_v50 = vmax.f32 %v325_v52, %v329_v53  ;;  %v338_v59 = vmax.f32 %v326_v55, %v330_v56 }
  0xd4   :  { %828 = vmatpush.bf16.msra.mxu1 %v1150_v36 }
  0xd5   :  { %v341_v60 = vpack.c.bf16 %v337_v50, %v333_v57  ;;  %v342_v61 = vpack.c.bf16 %v338_v59, %v334_v58 }
  0xd7   :  { %639 = vmatmul.bf16.vlgmr.msrb.gmra.mxu2 %v341_v60  ;;  %653 = vmatmul.bf16.vlgmr.msrb.gmra.mxu3 %v342_v61 }
  0xd8   :  { %829 = vmatpush.bf16.msra.mxu1 %v1149_v37 }
 0x134   :  { %v612_v7 = vpop.f32.mrf.mxu0 }
 0x135   :  { %v613_v10 = vadd.f32 %v1181_v8, %v612_v7  ;;  %v626_v12 = vpop.f32.mrf.mxu1 }
 0x137   :  { %v627_v13 = vadd.f32 %v626_v12, %v613_v10 }
 0x13c   :  { %v614_v15 = vpop.f32.mrf.mxu0 }
 0x13d   :  { %v615_v19 = vadd.f32 %v1181_v8, %v614_v15  ;;  %v628_v21 = vpop.f32.mrf.mxu1 }
 0x13f   :  { %v629_v22 = vadd.f32 %v628_v21, %v615_v19 }
 0x15a   :  { %v640_v16 = vpop.f32.mrf.mxu2  ;;  %v654_v18 = vpop.f32.mrf.mxu3 }
 0x15b   :  { %v641_v17 = vadd.f32 %v640_v16, %v627_v13 }
 0x15d   :  { %v655_v20 = vadd.f32 %v654_v18, %v641_v17 }
 0x15f   :  { %v659_v24 = vmax.f32 %v655_v20, 0.0 }
 0x161   :  { %v661_v28 = vpack.c.bf16 %v659_v24, %v659_v24 }
 0x162   :  { %v642_v23 = vpop.f32.mrf.mxu2  ;;  %v656_v26 = vpop.f32.mrf.mxu3 }
 0x163   :  { %v643_v25 = vadd.f32 %v642_v23, %v629_v22  ;;  %v685_v31 = vunpack.c.l.b16 %v661_v28 }
 0x165   :  { %v657_v27 = vadd.f32 %v656_v26, %v643_v25 }
 0x167   :  { %v660_v29 = vmax.f32 %v657_v27, 0.0 }
 0x169   :  { %v662_v30 = vpack.c.bf16 %v660_v29, %v660_v29 }
 0x16b   :  { %v686_v32 = vunpack.c.l.b16 %v662_v30 }
 0x16d   :  { %v687_v33 = vpack.c.b16 %v686_v32, %v685_v31 }
 0x16f   :  { %745 = vmatmul.bf16.vlgmr.msra.gmra.mxu0 %v687_v33 }
 0x1ec   :  { %v746_v38 = vpop.f32.mrf.mxu0 }
 0x1ed   :  { %v747_v40 = vadd.f32 %v1182_v39, %v746_v38 }
 0x1ef   :  { %v751_v43 = vmax.f32 %v747_v40, 0.0 }
 0x1f4   :  { %v748_v41 = vpop.f32.mrf.mxu0 }
 0x1f5   :  { %v749_v42 = vadd.f32 %v1182_v39, %v748_v41 }
 0x1f7   :  { %v752_v44 = vmax.f32 %v749_v42, 0.0 }
 0x1f9   :  { %v753_v45 = vpack.c.bf16 %v752_v44, %v751_v43 }
 0x1fb   :  { %830 = vmatmul.bf16.vlgmr.msra.gmra.mxu1 %v753_v45 }
 0x278   :  { %v831_v47 = vpop.f32.mrf.mxu1 }
 0x279   :  { %v832_v48 = vadd.f32 %v1183_v46, %v831_v47 }
 0x27b   :  { %v1160_v49 = vpack.c.bf16 %v832_v48, %v659_v24 }
 0x27d   :  { %1161 = vst [vmem:[#allocation13] sm:$0xff] %v1160_v49  }
 0x280   :  { %v833_v51 = vpop.f32.mrf.mxu1 }
 0x281   :  { %v834_v52 = vadd.f32 %v1183_v46, %v833_v51 }
 0x283   :  { %v1165_v53 = vpack.c.bf16 %v834_v52, %v660_v29 }
 0x285   :  { %1167 = vst [vmem:[#allocation13 + $0x8] sm:$0xff] %v1165_v53  }
 0x286   :  { %854 = dma.vmem_to_hbm [thread:$0]  %s847_s22, 256, %s849_s6, [#allocation4], %s1373_s24, %s1373_s24, %s1374_s25  }
 0x287   :  { %1360 = dma.done.wait [#allocation4], 256  }
 0x288   :  { %1361 = vsyncadd [#allocation4], 4294967040 }
 0x289   :  { %859 = vsyncpa [#allocation3], 1 }
 0x28a   :  { %860 = vsyncpa [#allocation6], 1 }
 0x28b   :  { %861 = vsyncpa [#allocation9], 1 }
 0x28c   :  { %862 = vsyncpa [#allocation12], 1 }
 0x28d   :  { %863 = vsyncpa [#allocation4], 1 }

</bundles_post_ra>
